<compile_context>
chip_gen: v6e
topology: v6e:2x2x1
jax: 0.10.0
libtpu: 0.0.40
codegen_flags: <defaults>
</compile_context>

<pallas_src>
import functools

import numpy as np
import jax
import jax.numpy as jnp
from jax.experimental import pallas as pl


# ------------------------------ fused Pallas kernel ------------------------------

def _tgcn_cell_kernel(lap_bd_ref, sel_ref, x_ref, h_ref, wb1_ref, wb2_ref, out_ref,
                      *, batch, num_nodes, hidden_dim):
    f32 = jnp.float32
    B, N, H = batch, num_nodes, hidden_dim
    BN = B * N

    def dot(a, b):
        return jnp.dot(a, b, preferred_element_type=f32)

    lap_bd = lap_bd_ref[...]              # (BN, BN)  block-diag kron(I_B, L)
    x_col = x_ref[...]                    # (BN, 1)
    h_bn = h_ref[...]                     # (BN, H)   rows = b*N + n

    # Packed weight slabs: rows [0:H] = W[1:, :] (hidden block), row H = W[0, :] (input
    # row), row H+1 = bias.  Static sublane slices of the loaded slab are cheap.
    wb1 = wb1_ref[...]                    # (H+2, 2H)
    w1h, w1x, b1 = wb1[:H, :], wb1[H:H + 1, :], wb1[H + 1:H + 2, :]
    wb2 = wb2_ref[...]                    # (H+2, H)
    w2h, w2x, b2 = wb2[:H, :], wb2[H:H + 1, :], wb2[H + 1:H + 2, :]

    # Chunk-interleave selectors, stacked rows: [sel_even; sel_odd], each (2BN, BN).
    sel = sel_ref[...]                    # (4BN, BN)
    sel_e = sel[:2 * BN, :]
    sel_o = sel[2 * BN:, :]

    # ---- shared Laplacian terms: one MXU pass each (no per-batch loops) ----
    lx = dot(lap_bd, x_col)               # (BN, 1)   == stack_b(L @ x_b)
    a1 = dot(lap_bd, h_bn)                # (BN, H)   == stack_b(L @ h_b)

    # ---- graph_conv1 + sigmoid; input-column term via VPU broadcast (no K=1 matmul) ----
    z1 = dot(a1, w1h) + lx * w1x + b1     # (BN, 2H)
    conc = jax.nn.sigmoid(z1)

    # ---- torch.chunk over the flattened (N*2H) axis ----
    # r[b*N+2q, :] = conc[b*N+q,     :H] ; r[b*N+2q+1, :] = conc[b*N+q,     H:]
    # u[b*N+2q, :] = conc[b*N+N/2+q, :H] ; u[b*N+2q+1, :] = conc[b*N+N/2+q, H:]
    # realized exactly with two 0/1 selector matmuls producing the stacked [r; u].
    ru = dot(sel_e, conc[:, :H]) + dot(sel_o, conc[:, H:])   # (2BN, H)
    r3 = ru[:BN, :]
    u3 = ru[BN:, :]

    # ---- graph_conv2 + tanh ----
    a2 = dot(lap_bd, r3 * h_bn)           # (BN, H)   == stack_b(L @ (r*h)_b)
    z2 = dot(a2, w2h) + lx * w2x + b2     # (BN, H)
    c = jnp.tanh(z2)

    # ---- GRU gate ----
    out_ref[...] = u3 * h_bn + (1.0 - u3) * c


# ------------------------------ host-side packing --------------------------------

def calculate_laplacian_with_self_loop(adj):
    m = adj + jnp.eye(adj.shape[0], dtype=adj.dtype)
    row_sum = m.sum(axis=1)
    d_inv_sqrt = row_sum ** -0.5
    d_inv_sqrt = jnp.where(jnp.isinf(d_inv_sqrt), 0.0, d_inv_sqrt)
    d_mat_inv_sqrt = jnp.diag(d_inv_sqrt)
    return (m @ d_mat_inv_sqrt).T @ d_mat_inv_sqrt


def _chunk_selectors(batch, num_nodes):
    """Constant 0/1 matrices reproducing torch.chunk over the flattened (N*2H) axis."""
    N, half, BN = num_nodes, num_nodes // 2, batch * num_nodes
    rows = np.arange(2 * BN)
    is_u = rows >= BN
    rr = np.where(is_u, rows - BN, rows)
    b, m = rr // N, rr % N
    target = b * N + m // 2 + np.where(is_u, half, 0)
    hit = np.arange(BN)[None, :] == target[:, None]
    sel_e = (hit & (m % 2 == 0)[:, None]).astype(np.float32)   # picks conc[:, :H]
    sel_o = (hit & (m % 2 == 1)[:, None]).astype(np.float32)   # picks conc[:, H:]
    return np.concatenate([sel_e, sel_o], axis=0)              # (4BN, BN)


def pack_tgcn_cell_params(params, batch_size):
    """One-time host packing: block-diag laplacian, weight/bias slabs, chunk selectors."""
    lap, w1, b1 = params["laplacian"], params["w1"], params["b1"]
    w2, b2 = params["w2"], params["b2"]
    H = params["hidden_dim"]
    N = lap.shape[0]
    assert N % 2 == 0, "even node count needed for the torch.chunk-on-flattened split"
    return {
        "hidden_dim": H,
        "num_nodes": N,
        "batch": batch_size,
        "lap_bd": jnp.kron(jnp.eye(batch_size, dtype=lap.dtype), lap),          # (B*N, B*N)
        "sel": jnp.asarray(_chunk_selectors(batch_size, N)),                    # (4*B*N, B*N)
        "wb1": jnp.concatenate([w1[1:], w1[0:1], b1.reshape(1, -1)], axis=0),   # (H+2, 2H)
        "wb2": jnp.concatenate([w2[1:], w2[0:1], b2.reshape(1, -1)], axis=0),   # (H+2, H)
    }


# --------------------------------- TGCNCell glue ----------------------------------

def tgcn_cell_forward(packed, inputs, hidden_state):
    B, N = inputs.shape
    H = packed["hidden_dim"]
    assert N == packed["num_nodes"] and B == packed["batch"]

    kernel = functools.partial(
        _tgcn_cell_kernel, batch=B, num_nodes=N, hidden_dim=H)

    new_h = pl.pallas_call(
        kernel,
        out_shape=jax.ShapeDtypeStruct((B * N, H), jnp.float32),
    )(
        packed["lap_bd"],                    # (B*N, B*N)
        packed["sel"],                       # (4*B*N, B*N)
        inputs.reshape(B * N, 1),            # (B*N, 1)
        hidden_state.reshape(B * N, H),      # (B*N, H)
        packed["wb1"],                       # (H+2, 2H)
        packed["wb2"],                       # (H+2, H)
    )
    # Keep consumers on (B, N, H) in a real model to make this relayout disappear.
    new_h = new_h.reshape(B, N * H)
    return new_h, new_h


# ------------------------ pure-JAX reference (torch semantics) ---------------------

def _graph_conv_ref(lap, w, bias, inputs, hidden, num_gru_units):
    B, N = inputs.shape
    H = num_gru_units
    cat = jnp.concatenate([inputs.reshape(B, N, 1), hidden.reshape(B, N, H)], axis=2)
    cat = jnp.transpose(cat, (1, 2, 0)).reshape(N, (H + 1) * B)
    a = lap @ cat
    a = a.reshape(N, H + 1, B)
    a = jnp.transpose(a, (2, 0, 1)).reshape(B * N, H + 1)
    out = a @ w + bias
    return out.reshape(B, N * w.shape[1])


def tgcn_cell_ref(params, inputs, hidden_state):
    H = params["hidden_dim"]
    B, N = inputs.shape
    conc = jax.nn.sigmoid(
        _graph_conv_ref(params["laplacian"], params["w1"], params["b1"],
                        inputs, hidden_state, H))
    r, u = conc[:, : N * H], conc[:, N * H:]
    c = jnp.tanh(
        _graph_conv_ref(params["laplacian"], params["w2"], params["b2"],
                        inputs, r * hidden_state, H))
    new_h = u * hidden_state + (1.0 - u) * c
    return new_h


# --------------------------------------- main --------------------------------------

def _xavier_uniform(key, shape):
    fan_in, fan_out = shape
    bound = (6.0 / (fan_in + fan_out)) ** 0.5
    return jax.random.uniform(key, shape, jnp.float32, -bound, bound)


if __name__ == "__main__":
    B, N, H = 2, 16, 32  # batch, num_nodes, hidden_dim (num_gru_units)

    key = jax.random.PRNGKey(0)
    k_adj, k_w1, k_w2, k_x, k_h = jax.random.split(key, 5)

    # deterministic random symmetric binary adjacency
    a = (jax.random.uniform(k_adj, (N, N)) > 0.7).astype(jnp.float32)
    adj = jnp.maximum(a, a.T)

    params = {
        "laplacian": calculate_laplacian_with_self_loop(adj),
        "hidden_dim": H,
        # graph_conv1: (H+1, 2H) weights, bias init 1.0
        "w1": _xavier_uniform(k_w1, (H + 1, 2 * H)),
        "b1": jnp.full((2 * H,), 1.0, dtype=jnp.float32),
        # graph_conv2: (H+1, H) weights, bias init 0.0
        "w2": _xavier_uniform(k_w2, (H + 1, H)),
        "b2": jnp.zeros((H,), dtype=jnp.float32),
    }

    inputs = jax.random.normal(k_x, (B, N), dtype=jnp.float32)
    hidden_state = jax.random.normal(k_h, (B, N * H), dtype=jnp.float32)

    packed = pack_tgcn_cell_params(params, batch_size=B)
    new_h, out = tgcn_cell_forward(packed, inputs, hidden_state)
    new_h = jax.block_until_ready(new_h)

    ref = tgcn_cell_ref(params, inputs, hidden_state)
    assert new_h.shape == (B, N * H)
    assert jnp.allclose(new_h, ref, rtol=1e-3, atol=1e-3), "mismatch vs reference"

    print("KERNEL_OK")
</pallas_src>

<mosaic_0001>
module attributes {stable_mosaic.version = 11 : i64} {
  func.func @_tgcn_cell_kernel(%arg0: memref<32x32xf32, #tpu.memory_space<vmem>>, %arg1: memref<128x32xf32, #tpu.memory_space<vmem>>, %arg2: memref<32x1xf32, #tpu.memory_space<vmem>>, %arg3: memref<32x32xf32, #tpu.memory_space<vmem>>, %arg4: memref<34x64xf32, #tpu.memory_space<vmem>>, %arg5: memref<34x32xf32, #tpu.memory_space<vmem>>, %arg6: memref<32x32xf32, #tpu.memory_space<vmem>>) attributes {dimension_semantics = [], scalar_prefetch = 0 : i64, scratch_operands = 0 : i64, tpu.core_type = #tpu.core_type<tc>} {
    %c0 = arith.constant 0 : index
    %c0_0 = arith.constant 0 : index
    %0 = vector.load %arg0[%c0, %c0_0] : memref<32x32xf32, #tpu.memory_space<vmem>>, vector<32x32xf32>
    %c0_1 = arith.constant 0 : index
    %c0_2 = arith.constant 0 : index
    %1 = vector.load %arg2[%c0_1, %c0_2] : memref<32x1xf32, #tpu.memory_space<vmem>>, vector<32x1xf32>
    %c0_3 = arith.constant 0 : index
    %c0_4 = arith.constant 0 : index
    %2 = vector.load %arg3[%c0_3, %c0_4] : memref<32x32xf32, #tpu.memory_space<vmem>>, vector<32x32xf32>
    %c0_5 = arith.constant 0 : index
    %c0_6 = arith.constant 0 : index
    %3 = vector.load %arg4[%c0_5, %c0_6] : memref<34x64xf32, #tpu.memory_space<vmem>>, vector<34x64xf32>
    %4 = vector.extract_strided_slice %3 {offsets = [0, 0], sizes = [32, 64], strides = [1, 1]} : vector<34x64xf32> to vector<32x64xf32>
    %5 = vector.extract_strided_slice %3 {offsets = [32, 0], sizes = [1, 64], strides = [1, 1]} : vector<34x64xf32> to vector<1x64xf32>
    %6 = vector.extract_strided_slice %3 {offsets = [33, 0], sizes = [1, 64], strides = [1, 1]} : vector<34x64xf32> to vector<1x64xf32>
    %c0_7 = arith.constant 0 : index
    %c0_8 = arith.constant 0 : index
    %7 = vector.load %arg5[%c0_7, %c0_8] : memref<34x32xf32, #tpu.memory_space<vmem>>, vector<34x32xf32>
    %8 = vector.extract_strided_slice %7 {offsets = [0, 0], sizes = [32, 32], strides = [1, 1]} : vector<34x32xf32> to vector<32x32xf32>
    %9 = vector.extract_strided_slice %7 {offsets = [32, 0], sizes = [1, 32], strides = [1, 1]} : vector<34x32xf32> to vector<1x32xf32>
    %10 = vector.extract_strided_slice %7 {offsets = [33, 0], sizes = [1, 32], strides = [1, 1]} : vector<34x32xf32> to vector<1x32xf32>
    %c0_9 = arith.constant 0 : index
    %c0_10 = arith.constant 0 : index
    %11 = vector.load %arg1[%c0_9, %c0_10] : memref<128x32xf32, #tpu.memory_space<vmem>>, vector<128x32xf32>
    %12 = vector.extract_strided_slice %11 {offsets = [0, 0], sizes = [64, 32], strides = [1, 1]} : vector<128x32xf32> to vector<64x32xf32>
    %13 = vector.extract_strided_slice %11 {offsets = [64, 0], sizes = [64, 32], strides = [1, 1]} : vector<128x32xf32> to vector<64x32xf32>
    %cst = arith.constant dense<0.000000e+00> : vector<32x1xf32>
    %14 = tpu.matmul %0, %1, %cst {dimension_numbers = #tpu.dot_dimension_numbers<[1], [0], [0], [1], [0, 0, 1, 1], [], []>} : vector<32x32xf32>, vector<32x1xf32>, vector<32x1xf32> -> vector<32x1xf32>
    %cst_11 = arith.constant dense<0.000000e+00> : vector<32x32xf32>
    %15 = tpu.matmul %0, %2, %cst_11 {dimension_numbers = #tpu.dot_dimension_numbers<[1], [0], [0], [1], [0, 0, 1, 1], [], []>} : vector<32x32xf32>, vector<32x32xf32>, vector<32x32xf32> -> vector<32x32xf32>
    %cst_12 = arith.constant dense<0.000000e+00> : vector<32x64xf32>
    %16 = tpu.matmul %15, %4, %cst_12 {dimension_numbers = #tpu.dot_dimension_numbers<[1], [0], [0], [1], [0, 0, 1, 1], [], []>} : vector<32x32xf32>, vector<32x64xf32>, vector<32x64xf32> -> vector<32x64xf32>
    %17 = vector.broadcast %14 : vector<32x1xf32> to vector<32x64xf32>
    %18 = vector.broadcast %5 : vector<1x64xf32> to vector<32x64xf32>
    %19 = arith.mulf %17, %18 : vector<32x64xf32>
    %20 = arith.addf %16, %19 : vector<32x64xf32>
    %21 = vector.broadcast %6 : vector<1x64xf32> to vector<32x64xf32>
    %22 = arith.addf %20, %21 : vector<32x64xf32>
    %23 = arith.negf %22 : vector<32x64xf32>
    %24 = math.exp %23 : vector<32x64xf32>
    %cst_13 = arith.constant 1.000000e+00 : f32
    %25 = vector.broadcast %cst_13 : f32 to vector<32x64xf32>
    %26 = arith.addf %25, %24 : vector<32x64xf32>
    %27 = arith.divf %25, %26 : vector<32x64xf32>
    %28 = vector.extract_strided_slice %27 {offsets = [0, 0], sizes = [32, 32], strides = [1, 1]} : vector<32x64xf32> to vector<32x32xf32>
    %cst_14 = arith.constant dense<0.000000e+00> : vector<64x32xf32>
    %29 = tpu.matmul %12, %28, %cst_14 {dimension_numbers = #tpu.dot_dimension_numbers<[1], [0], [0], [1], [0, 0, 1, 1], [], []>} : vector<64x32xf32>, vector<32x32xf32>, vector<64x32xf32> -> vector<64x32xf32>
    %30 = vector.extract_strided_slice %27 {offsets = [0, 32], sizes = [32, 32], strides = [1, 1]} : vector<32x64xf32> to vector<32x32xf32>
    %cst_15 = arith.constant dense<0.000000e+00> : vector<64x32xf32>
    %31 = tpu.matmul %13, %30, %cst_15 {dimension_numbers = #tpu.dot_dimension_numbers<[1], [0], [0], [1], [0, 0, 1, 1], [], []>} : vector<64x32xf32>, vector<32x32xf32>, vector<64x32xf32> -> vector<64x32xf32>
    %32 = arith.addf %29, %31 : vector<64x32xf32>
    %33 = vector.extract_strided_slice %32 {offsets = [0, 0], sizes = [32, 32], strides = [1, 1]} : vector<64x32xf32> to vector<32x32xf32>
    %34 = vector.extract_strided_slice %32 {offsets = [32, 0], sizes = [32, 32], strides = [1, 1]} : vector<64x32xf32> to vector<32x32xf32>
    %35 = arith.mulf %33, %2 : vector<32x32xf32>
    %cst_16 = arith.constant dense<0.000000e+00> : vector<32x32xf32>
    %36 = tpu.matmul %0, %35, %cst_16 {dimension_numbers = #tpu.dot_dimension_numbers<[1], [0], [0], [1], [0, 0, 1, 1], [], []>} : vector<32x32xf32>, vector<32x32xf32>, vector<32x32xf32> -> vector<32x32xf32>
    %cst_17 = arith.constant dense<0.000000e+00> : vector<32x32xf32>
    %37 = tpu.matmul %36, %8, %cst_17 {dimension_numbers = #tpu.dot_dimension_numbers<[1], [0], [0], [1], [0, 0, 1, 1], [], []>} : vector<32x32xf32>, vector<32x32xf32>, vector<32x32xf32> -> vector<32x32xf32>
    %38 = vector.broadcast %14 : vector<32x1xf32> to vector<32x32xf32>
    %39 = vector.broadcast %9 : vector<1x32xf32> to vector<32x32xf32>
    %40 = arith.mulf %38, %39 : vector<32x32xf32>
    %41 = arith.addf %37, %40 : vector<32x32xf32>
    %42 = vector.broadcast %10 : vector<1x32xf32> to vector<32x32xf32>
    %43 = arith.addf %41, %42 : vector<32x32xf32>
    %44 = math.tanh %43 : vector<32x32xf32>
    %45 = arith.mulf %34, %2 : vector<32x32xf32>
    %cst_18 = arith.constant 1.000000e+00 : f32
    %46 = vector.broadcast %cst_18 : f32 to vector<32x32xf32>
    %47 = arith.subf %46, %34 : vector<32x32xf32>
    %48 = arith.mulf %47, %44 : vector<32x32xf32>
    %49 = arith.addf %45, %48 : vector<32x32xf32>
    %c0_19 = arith.constant 0 : index
    %c0_20 = arith.constant 0 : index
    %50 = vector.load %arg6[%c0_19, %c0_20] : memref<32x32xf32, #tpu.memory_space<vmem>>, vector<32x32xf32>
    tpu.vector_store %arg6[%c0_19, %c0_20], %49 {strides = array<i32>} : memref<32x32xf32, #tpu.memory_space<vmem>>, vector<32x32xf32>,
    return
  }
}

</mosaic_0001>

<bundles_post_ra>
// kernel: tpu_custom_call.1
= control target key start
LH: loop header
LB: loop body
LE: loop exit
PB: predicated region body
PF: predicated region fallthrough
CT: control target
= control target key end

     0   :  { %vm62_vm0 = vcmask 261120   ;;  %s1466_s0 = inlined_call_operand.vmem [shape: f32[32,32], index: 0, kind: input, shape index: {}]   ;;  %s1467_s1 = inlined_call_operand.vmem [shape: f32[128,32], index: 1, kind: input, shape index: {}]   ;;  %s1468_s2 = inlined_call_operand.vmem [shape: f32[32,1], index: 2, kind: input, shape index: {}]   ;;  %s1469_s3 = inlined_call_operand.vmem [shape: f32[32,32], index: 3, kind: input, shape index: {}]   ;;  %s1470_s4 = inlined_call_operand.vmem [shape: f32[34,64], index: 4, kind: input, shape index: {}]   ;;  %s1471_s5 = inlined_call_operand.vmem [shape: f32[34,32], index: 5, kind: input, shape index: {}]   ;;  %s1472_s6 = inlined_call_operand.hbm [shape: f32[32,32], index: 6, kind: output, shape index: {}]  }
   0x1   :  { %v1236_v0 = vld [vmem:[%s1469_s3 + $0x18] sm:$0xff]  ;;  %v1241_v1 = vld [vmem:[%s1469_s3 + $0x10] sm:$0xff]  ;;  %v1247_v2 = vld [vmem:[%s1466_s0] sm:$0xff] }
   0x2   :  { %1036 = vmatprep.subr.mxu1 %v1236_v0  ;;  %v1253_v3 = vld [vmem:[%s1469_s3 + $0x8] sm:$0xff]  ;;  %1044 = vmatprep.mubr.msk.f32.mxu1 %vm62_vm0, %v1247_v2  ;;  %v31_v4 = vld [vmem:[%s1468_s2 + $0x18] sm:$0xff]  ;;  %v30_v5 = vld [vmem:[%s1468_s2 + $0x10] sm:$0xff] }
   0x3   :  { %1037 = vmatpush3.msra.mxu1 %v1236_v0  ;;  %1022 = vmatprep.subr.mxu0 %v31_v4  ;;  %v1268_v6 = vld [vmem:[%s1469_s3] sm:$0xff]  ;;  %v29_v7 = vld [vmem:[%s1468_s2 + $0x8] sm:$0xff] }
   0x4   :  { %1038 = vmatprep.subr.mxu1 %v1241_v1  ;;  %1023 = vmatpush3.msra.mxu0 %v31_v4 }
   0x5   :  { %1039 = vmatpush3.msra.mxu1 %v1241_v1 }
   0x6   :  { %11 = vsyncpa [#allocation3], 0  ;;  %1040 = vmatprep.subr.mxu1 %v1253_v3  ;;  %1024 = vmatprep.subr.mxu0 %v30_v5  ;;  %v1278_v8 = vld [vmem:[%s1466_s0 + $0x8] sm:$0xff]  ;;  %v28_v9 = vld [vmem:[%s1468_s2] sm:$0xff]  ;;  %v1193_v16 = vmov 0   ;;  %v265_v25 = vlaneseq  ;;  %s1194_s9 = smov 96  }
   0x7   :  { %1041 = vmatpush3.msra.mxu1 %v1253_v3  ;;  %1025 = vmatpush3.msra.mxu0 %v30_v5  ;;  %v1287_v10 = vld [vmem:[%s1466_s0 + $0x10] sm:$0xff]  ;;  %v39_v11 = vld [vmem:[%s1470_s4 + $0x18] sm:$0xff]  ;;  %v37_v14 = vld [vmem:[%s1470_s4 + $0x8] sm:$0xff] }
   0x8   :  { %1042 = vmatprep.subr.mxu1 %v1268_v6  ;;  %1026 = vmatprep.subr.mxu0 %v29_v7  ;;  %v1300_v12 = vld [vmem:[%s1466_s0 + $0x18] sm:$0xff]  ;;  %v38_v13 = vld [vmem:[%s1470_s4 + $0x10] sm:$0xff]  ;;  %v36_v15 = vld [vmem:[%s1470_s4] sm:$0xff]  ;;  %v1325_v26 = vshrl.u32 %v265_v25, 7 }
   0x9   :  { %1043 = vmatpush3.msra.mxu1 %v1268_v6  ;;  %1027 = vmatpush3.msra.mxu0 %v29_v7  ;;  %v1331_v28 = vld [vmem:[%s1471_s5 + $0x20] sm:$0x3]  ;;  %v55_v25 = vld [vmem:[%s1467_s1 + $0x48] sm:$0xff] }
   0xa   :  { %1045 = vmatmul.mubr.msk.f32.vlgmr.msra.gmra.mxu1 %vm62_vm0, %v1278_v8  ;;  %1028 = vmatprep.subr.mxu0 %v28_v9  ;;  %v267_v27 = vsub.s32 0, %v1325_v26  ;;  %v40_v34 = vld [vmem:[%s1470_s4 + $0x20] sm:$0x3]  ;;  %v372_v36 = vsub.s32 1, %v1325_v26 }
   0xb   :  { %1047 = vmatprep.mubr.msk.f32.mxu1 %vm62_vm0, %v1287_v10  ;;  %1029 = vmatpush3.msra.mxu0 %v28_v9 }
   0xc   :  { %1030 = vmatprep.mubr.msk.f32.mxu0 %vm62_vm0, %v1247_v2  ;;  %1050 = vmatprep.subr.mxu0 %v39_v11  ;;  %v1334_v29 = vrot.slane %v1331_v28, %v267_v27  ;;  %v268_v35 = vrot.slane %v40_v34, %v267_v27  ;;  %v373_v39 = vrot.slane %v40_v34, %v372_v36  ;;  %v56_v27 = vld [vmem:[%s1467_s1 + $0x50] sm:$0xff]  ;;  %v50_v34 = vld [vmem:[%s1467_s1 + $0x20] sm:$0xff] }
   0xd   :  { %1031 = vmatmul.mubr.msk.f32.vlgmr.msra.gmra.mxu0 %vm62_vm0, %v1278_v8  ;;  %1146 = vset.pattern.permute.xlu1 %v1193_v16 }
   0xe   :  { %1048 = vmatmul.mubr.msk.f32.gmra.mxu1 %vm62_vm0, %v1300_v12  ;;  %1033 = vmatprep.mubr.msk.f32.mxu0 %vm62_vm0, %v1287_v10 }
   0xf   :  { %1051 = vmatpush3.msra.mxu0 %v39_v11  ;;  %1145 = vset.pattern.permute.xlu0 %v1193_v16  ;;  %v46_v11 = vld [vmem:[%s1467_s1] sm:$0xff] }
  0x10   :  { %1052 = vmatprep.subr.mxu0 %v38_v13 }
  0x11   :  { %1034 = vmatmul.mubr.msk.f32.gmra.mxu0 %vm62_vm0, %v1300_v12 }
  0x12   :  { %1053 = vmatpush3.msra.mxu0 %v38_v13  ;;  %v54_v13 = vld [vmem:[%s1467_s1 + $0x40] sm:$0xff] }
  0x13   :  { %1054 = vmatprep.subr.mxu0 %v37_v14  ;;  %1072 = vmatprep.mubr.msk.f32.mxu1 %vm62_vm0, %v54_v13 }
  0x14   :  { %1055 = vmatpush3.msra.mxu0 %v37_v14 }
  0x15   :  { %1056 = vmatprep.subr.mxu0 %v36_v15 }
  0x16   :  { %1057 = vmatpush3.msra.mxu0 %v36_v15 }
  0xca   :  { %v1046_v17 = vpop.f32.mrf.mxu1 }
  0xcc   :  { %v226_v18 = vpop.f32.mrf.mxu1 }
  0xcd   :  { %1058 = vmatprep.mubr.msk.f32.mxu0 %vm62_vm0, %v226_v18  ;;  %v1032_v19 = vpop.f32.mrf.mxu0  ;;  %v47_v18 = vld [vmem:[%s1467_s1 + $0x8] sm:$0xff] }
  0xce   :  { %v1049_v20 = vpop.f32.mrf.mxu1  ;;  %1059 = vmatmul.mubr.msk.f32.vlgmr.msra.gmra.mxu0 %vm62_vm0, %v1046_v17  ;;  %252 = vperm.xlu1 %1146, %v1032_v19   ;;  %v48_v19 = vld [vmem:[%s1467_s1 + $0x10] sm:$0xff] }
  0xcf   :  { %v141_v21 = vpop.f32.mrf.mxu0 }
  0xd0   :  { %v236_v22 = vpop.f32.mrf.mxu1 }
  0xd1   :  { %1061 = vmatprep.mubr.msk.f32.mxu0 %vm62_vm0, %v236_v22  ;;  %v1035_v23 = vpop.f32.mrf.mxu0 }
  0xd2   :  { %1062 = vmatmul.mubr.msk.f32.gmra.mxu0 %vm62_vm0, %v1049_v20  ;;  %247 = vperm.xlu1 %1146, %v141_v21   ;;  %v49_v20 = vld [vmem:[%s1467_s1 + $0x18] sm:$0xff] }
  0xd3   :  { %262 = vperm.xlu0 %1145, %v1035_v23   ;;  %v151_v24 = vpop.f32.mrf.mxu0  ;;  %1092 = vmatprep.mubr.msk.f32.mxu0 %vm62_vm0, %v46_v11 }
  0xd7   :  { %257 = vperm.xlu0 %1145, %v151_v24  }
 0x149   :  { %v253_v30 = vpop.permute.xlu1 %252 }
 0x14a   :  { %v1337_v31 = vmul.f32 %v1334_v29, %v253_v30  ;;  %v270_v38 = vmul.f32 %v268_v35, %v253_v30  ;;  %v57_v30 = vld [vmem:[%s1467_s1 + $0x58] sm:$0xff] }
 0x14d   :  { %v1346_v37 = vpop.permute.xlu1 %247 }
 0x14e   :  { %v263_v32 = vpop.permute.xlu0 %262  ;;  %v269_v41 = vmul.f32 %v268_v35, %v1346_v37 }
 0x14f   :  { %v1340_v33 = vmul.f32 %v1334_v29, %v263_v32  ;;  %v272_v45 = vmul.f32 %v268_v35, %v263_v32  ;;  %v58_v32 = vld [vmem:[%s1467_s1 + $0x60] sm:$0xff] }
 0x152   :  { %v1351_v43 = vpop.permute.xlu0 %257 }
 0x153   :  { %v271_v49 = vmul.f32 %v268_v35, %v1351_v43  ;;  %v59_v35 = vld [vmem:[%s1467_s1 + $0x68] sm:$0xff] }
 0x18e   :  { %v1060_v40 = vpop.f32.mrf.mxu0 }
 0x18f   :  { %v357_v42 = vadd.f32 %v1060_v40, %v270_v38  ;;  %v51_v38 = vld [vmem:[%s1467_s1 + $0x28] sm:$0xff]  ;;  %v52_v40 = vld [vmem:[%s1467_s1 + $0x30] sm:$0xff] }
 0x190   :  { %v351_v44 = vpop.f32.mrf.mxu0 }
 0x191   :  { %v375_v46 = vadd.f32 %v373_v39, %v357_v42  ;;  %v352_v47 = vadd.f32 %v351_v44, %v269_v41  ;;  %v61_v41 = vld [vmem:[%s1467_s1 + $0x78] sm:$0xff] }
 0x192   :  { %v1063_v48 = vpop.f32.mrf.mxu0  ;;  %v53_v42 = vld [vmem:[%s1467_s1 + $0x38] sm:$0xff] }
 0x193   :  { %v374_v50 = vadd.f32 %v373_v39, %v352_v47  ;;  %v367_v51 = vadd.f32 %v1063_v48, %v272_v45  ;;  %v931_v52 = vmul.f32 -1.442695, %v375_v46  ;;  %v44_v44 = vld [vmem:[%s1471_s5 + $0x18] sm:$0xff]  ;;  %v43_v45 = vld [vmem:[%s1471_s5 + $0x10] sm:$0xff] }
 0x194   :  { %v361_v53 = vpop.f32.mrf.mxu0 }
 0x195   :  { %v377_v54 = vadd.f32 %v373_v39, %v367_v51  ;;  %v362_v55 = vadd.f32 %v361_v53, %v271_v49  ;;  %v930_v56 = vmul.f32 -1.442695, %v374_v50  ;;  %1147 = vpow2.f32 %v931_v52 }
 0x197   :  { %v933_v57 = vmul.f32 -1.442695, %v377_v54  ;;  %v376_v58 = vadd.f32 %v373_v39, %v362_v55  ;;  %v60_v39 = vld [vmem:[%s1467_s1 + $0x70] sm:$0xff] }
 0x199   :  { %1149 = vpow2.f32 %v933_v57  ;;  %v932_v59 = vmul.f32 -1.442695, %v376_v58 }
 0x19a   :  { %1151 = vpow2.f32 %v930_v56 }
 0x19b   :  { %1153 = vpow2.f32 %v932_v59 }
 0x1a2   :  { %v1148_v60 = vpop.eup %1147 }
 0x1a3   :  { %v391_v5 = vadd.f32 1.0, %v1148_v60 }
 0x1a6   :  { %v1150_v61 = vpop.eup %1149 }
 0x1a7   :  { %v1152_v62 = vpop.eup %1151  ;;  %v393_v63 = vadd.f32 1.0, %v1150_v61  ;;  %v42_v61 = vld [vmem:[%s1471_s5 + $0x8] sm:$0xff] }
 0x1a8   :  { %v1154_v4 = vpop.eup %1153  ;;  %v390_v9 = vadd.f32 1.0, %v1152_v62 }
 0x1a9   :  { %1155 = vrcp.f32 %v393_v63  ;;  %v392_v7 = vadd.f32 1.0, %v1154_v4 }
 0x1ab   :  { %1157 = vrcp.f32 %v392_v7 }
 0x1ac   :  { %1159 = vrcp.f32 %v391_v5 }
 0x1ad   :  { %1161 = vrcp.f32 %v390_v9 }
 0x1b6   :  { %v1156_v14 = vpop.eup %1155 }
 0x1b7   :  { %412 = vrot.lane.b32.xlu0 %v1156_v14, %s1194_s9  ;;  %1084 = vmatprep.subr.mxu0 %v1156_v14 }
 0x1b8   :  { %v1158_v15 = vpop.eup %1157  ;;  %1085 = vmatpush3.msra.mxu0 %v1156_v14 }
 0x1b9   :  { %410 = vrot.lane.b32.xlu1 %v1158_v15, %s1194_s9  ;;  %1086 = vmatprep.subr.mxu0 %v1158_v15  ;;  %v1160_v16 = vpop.eup %1159 }
 0x1ba   :  { %1087 = vmatpush3.msra.mxu0 %v1158_v15  ;;  %v1162_v17 = vpop.eup %1161 }
 0x1bb   :  { %408 = vrot.lane.b32.xlu0 %v1160_v16, %s1194_s9  ;;  %1088 = vmatprep.subr.mxu0 %v1160_v16 }
 0x1bc   :  { %1089 = vmatpush3.msra.mxu0 %v1160_v16  ;;  %v873_v16 = vrot.slane %v1331_v28, %v372_v36 }
 0x1bd   :  { %406 = vrot.lane.b32.xlu1 %v1162_v17, %s1194_s9  ;;  %1090 = vmatprep.subr.mxu0 %v1162_v17 }
 0x1be   :  { %1091 = vmatpush3.msra.mxu0 %v1162_v17 }
 0x1bf   :  { %1093 = vmatmul.mubr.msk.f32.vlgmr.msra.gmra.mxu0 %vm62_vm0, %v47_v18  ;;  %1118 = vmatprep.subr.mxu0 %v44_v44  ;;  %v769_v18 = vmul.f32 %v1334_v29, %v1346_v37 }
 0x1c0   :  { %1095 = vmatprep.mubr.msk.f32.mxu0 %vm62_vm0, %v48_v19  ;;  %1119 = vmatpush3.msra.mxu0 %v44_v44 }
 0x1c1   :  { %1120 = vmatprep.subr.mxu0 %v43_v45 }
 0x1c2   :  { %1121 = vmatpush3.msra.mxu0 %v43_v45 }
 0x1c3   :  { %1096 = vmatmul.mubr.msk.f32.gmra.mxu0 %vm62_vm0, %v49_v20  ;;  %1122 = vmatprep.subr.mxu0 %v42_v61 }
 0x1c4   :  { %1098 = vmatprep.mubr.msk.f32.mxu0 %vm62_vm0, %v50_v34  ;;  %1123 = vmatpush3.msra.mxu0 %v42_v61 }
 0x1c7   :  { %1099 = vmatmul.mubr.msk.f32.gmra.mxu0 %vm62_vm0, %v51_v38 }
 0x1c8   :  { %1101 = vmatprep.mubr.msk.f32.mxu0 %vm62_vm0, %v52_v40 }
 0x1cb   :  { %1102 = vmatmul.mubr.msk.f32.gmra.mxu0 %vm62_vm0, %v53_v42 }
 0x229   :  { %v413_v21 = vpop.permute.xlu0 %412 }
 0x22a   :  { %1064 = vmatprep.subr.mxu1 %v413_v21 }
 0x22b   :  { %1065 = vmatpush3.msra.mxu1 %v413_v21  ;;  %v411_v22 = vpop.permute.xlu1 %410 }
 0x22c   :  { %1066 = vmatprep.subr.mxu1 %v411_v22 }
 0x22d   :  { %v409_v23 = vpop.permute.xlu0 %408  ;;  %1067 = vmatpush3.msra.mxu1 %v411_v22 }
 0x22e   :  { %1068 = vmatprep.subr.mxu1 %v409_v23 }
 0x22f   :  { %1069 = vmatpush3.msra.mxu1 %v409_v23  ;;  %v407_v24 = vpop.permute.xlu1 %406 }
 0x230   :  { %1070 = vmatprep.subr.mxu1 %v407_v24 }
 0x231   :  { %1071 = vmatpush3.msra.mxu1 %v407_v24  ;;  %v771_v24 = vmul.f32 %v1334_v29, %v1351_v43 }
 0x232   :  { %1073 = vmatmul.mubr.msk.f32.vlgmr.msra.gmra.mxu1 %vm62_vm0, %v55_v25 }
 0x233   :  { %1075 = vmatprep.mubr.msk.f32.mxu1 %vm62_vm0, %v56_v27 }
 0x236   :  { %1076 = vmatmul.mubr.msk.f32.gmra.mxu1 %vm62_vm0, %v57_v30 }
 0x237   :  { %1078 = vmatprep.mubr.msk.f32.mxu1 %vm62_vm0, %v58_v32 }
 0x23a   :  { %1079 = vmatmul.mubr.msk.f32.gmra.mxu1 %vm62_vm0, %v59_v35 }
 0x23b   :  { %1081 = vmatprep.mubr.msk.f32.mxu1 %vm62_vm0, %v60_v39 }
 0x23e   :  { %1082 = vmatmul.mubr.msk.f32.gmra.mxu1 %vm62_vm0, %v61_v41 }
 0x23f   :  { %1112 = vmatprep.mubr.msk.f32.mxu1 %vm62_vm0, %v1247_v2 }
 0x27f   :  { %v1094_v46 = vpop.f32.mrf.mxu0 }
 0x281   :  { %v637_v47 = vpop.f32.mrf.mxu0 }
 0x283   :  { %v1097_v50 = vpop.f32.mrf.mxu0 }
 0x285   :  { %v647_v2 = vpop.f32.mrf.mxu0 }
 0x287   :  { %v1100_v11 = vpop.f32.mrf.mxu0 }
 0x289   :  { %v657_v13 = vpop.f32.mrf.mxu0 }
 0x28b   :  { %v1103_v14 = vpop.f32.mrf.mxu0 }
 0x28d   :  { %v667_v15 = vpop.f32.mrf.mxu0 }
 0x2f2   :  { %v1074_v48 = vpop.f32.mrf.mxu1 }
 0x2f3   :  { %v643_v54 = vadd.f32 %v1094_v46, %v1074_v48 }
 0x2f4   :  { %v508_v49 = vpop.f32.mrf.mxu1 }
 0x2f5   :  { %v638_v57 = vadd.f32 %v637_v47, %v508_v49  ;;  %v677_v59 = vmul.f32 %v643_v54, %v1253_v3 }
 0x2f6   :  { %v1077_v51 = vpop.f32.mrf.mxu1 }
 0x2f7   :  { %v653_v52 = vadd.f32 %v1097_v50, %v1077_v51  ;;  %v676_v60 = vmul.f32 %v638_v57, %v1268_v6 }
 0x2f8   :  { %v518_v53 = vpop.f32.mrf.mxu1 }
 0x2f9   :  { %v679_v55 = vmul.f32 %v653_v52, %v1236_v0  ;;  %v648_v56 = vadd.f32 %v647_v2, %v518_v53 }
 0x2fb   :  { %v678_v58 = vmul.f32 %v648_v56, %v1241_v1  ;;  %1104 = vmatprep.subr.mxu1 %v679_v55 }
 0x2fc   :  { %1105 = vmatpush3.msra.mxu1 %v679_v55 }
 0x2fd   :  { %1106 = vmatprep.subr.mxu1 %v678_v58 }
 0x2fe   :  { %1107 = vmatpush3.msra.mxu1 %v678_v58 }
 0x2ff   :  { %1108 = vmatprep.subr.mxu1 %v677_v59 }
 0x300   :  { %1109 = vmatpush3.msra.mxu1 %v677_v59 }
 0x301   :  { %1110 = vmatprep.subr.mxu1 %v676_v60 }
 0x302   :  { %1111 = vmatpush3.msra.mxu1 %v676_v60 }
 0x303   :  { %1113 = vmatmul.mubr.msk.f32.vlgmr.msra.gmra.mxu1 %vm62_vm0, %v1278_v8  ;;  %1132 = vmatprep.subr.mxu1 %v44_v44  ;;  %v41_v8 = vld [vmem:[%s1471_s5] sm:$0xff]  ;;  %s1195_s5 = smov [#allocation2]  }
 0x304   :  { %1115 = vmatprep.mubr.msk.f32.mxu1 %vm62_vm0, %v1287_v10  ;;  %1136 = vmatpush3.msra.mxu1 %v44_v44  ;;  %v1080_v10 = vpop.f32.mrf.mxu1  ;;  %s907_s16 = sshll.u32 %s1195_s5, 4  ;;  %s908_s16 = int_to_ptr.vmem [resolvable:$true] %s907_s16 }
 0x305   :  { %1133 = vmatprep.subr.mxu1 %v43_v45  ;;  %1124 = vmatprep.subr.mxu0 %v41_v8  ;;  %v663_v37 = vadd.f32 %v1100_v11, %v1080_v10  ;;  %s1171_s17 = scalar_lea.vmem %s908_s16, 512  ;;  %p1176_p1 = scmp.lt.s32.totalorder %s908_s16, %s908_s16 }
 0x306   :  { %1137 = vmatpush3.msra.mxu1 %v43_v45  ;;  %1125 = vmatpush3.msra.mxu0 %v41_v8  ;;  %v528_v62 = vpop.f32.mrf.mxu1  ;;  %p1172_p0 = scmp.ne.s32.totalorder %s908_s16, %s1171_s17  ;;  %p1177_p2 = scmp.lt.s32.totalorder %s1171_s17, %s1171_s17 }
 0x307   :  { %1116 = vmatmul.mubr.msk.f32.gmra.mxu1 %vm62_vm0, %v1300_v12  ;;  %1134 = vmatprep.subr.mxu1 %v42_v61  ;;  %v887_v32 = vsub.f32 1.0, %v663_v37  ;;  %v883_v38 = vmul.f32 %v663_v37, %v1253_v3 }
 0x308   :  { %1138 = vmatpush3.msra.mxu1 %v42_v61  ;;  %v1083_v63 = vpop.f32.mrf.mxu1  ;;  %p1178_p3 = por %p1177_p2, %p1176_p1 }
 0x309   :  { %1135 = vmatprep.subr.mxu1 %v41_v8  ;;  %v673_v34 = vadd.f32 %v1103_v14, %v1083_v63 }
 0x30a   :  { %1139 = vmatpush3.msra.mxu1 %v41_v8  ;;  %v538_v12 = vpop.f32.mrf.mxu1  ;;  %p1179_p4 = pnand %p1178_p3, %p1172_p0 }
 0x30b   :  { %v668_v29 = vadd.f32 %v667_v15, %v538_v12  ;;  %v889_v41 = vsub.f32 1.0, %v673_v34  ;;  %v885_v46 = vmul.f32 %v673_v34, %v1236_v0 }
 0x30d   :  { %v888_v47 = vsub.f32 1.0, %v668_v29  ;;  %v884_v50 = vmul.f32 %v668_v29, %v1241_v1 }
 0x3c3   :  { %v1114_v4 = vpop.f32.mrf.mxu1 }
 0x3c5   :  { %v746_v5 = vpop.f32.mrf.mxu1 }
 0x3c6   :  { %1126 = vmatprep.mubr.msk.f32.mxu0 %vm62_vm0, %v746_v5 }
 0x3c7   :  { %v1117_v7 = vpop.f32.mrf.mxu1  ;;  %1127 = vmatmul.mubr.msk.f32.vlgmr.msra.gmra.mxu0 %vm62_vm0, %v1114_v4 }
 0x3c9   :  { %v756_v9 = vpop.f32.mrf.mxu1 }
 0x3ca   :  { %1129 = vmatprep.mubr.msk.f32.mxu1 %vm62_vm0, %v756_v9 }
 0x3cb   :  { %1130 = vmatmul.mubr.msk.f32.vlgmr.msra.gmra.mxu1 %vm62_vm0, %v1117_v7 }
 0x487   :  { %v1128_v17 = vpop.f32.mrf.mxu0 }
 0x488   :  { %v857_v19 = vadd.f32 %v1128_v17, %v1337_v31  ;;  %v658_v31 = vadd.f32 %v657_v13, %v528_v62 }
 0x489   :  { %v851_v20 = vpop.f32.mrf.mxu0 }
 0x48a   :  { %v875_v21 = vadd.f32 %v873_v16, %v857_v19  ;;  %v852_v22 = vadd.f32 %v851_v20, %v769_v18  ;;  %v886_v39 = vsub.f32 1.0, %v658_v31 }
 0x48b   :  { %v1131_v23 = vpop.f32.mrf.mxu1 }
 0x48c   :  { %1163 = vtanh.f32 %v875_v21  ;;  %v874_v25 = vadd.f32 %v873_v16, %v852_v22  ;;  %v867_v27 = vadd.f32 %v1131_v23, %v1340_v33  ;;  %v882_v33 = vmul.f32 %v658_v31, %v1268_v6 }
 0x48d   :  { %v861_v26 = vpop.f32.mrf.mxu1 }
 0x48e   :  { %1165 = vtanh.f32 %v874_v25  ;;  %v877_v28 = vadd.f32 %v873_v16, %v867_v27  ;;  %v862_v36 = vadd.f32 %v861_v26, %v771_v24 }
 0x490   :  { %1167 = vtanh.f32 %v877_v28  ;;  %v876_v30 = vadd.f32 %v873_v16, %v862_v36 }
 0x492   :  { %1169 = vtanh.f32 %v876_v30 }
 0x499   :  { %v1164_v35 = vpop.eup %1163 }
 0x49a   :  { %v891_v43 = vmul.f32 %v1164_v35, %v887_v32 }
 0x49b   :  { %v1166_v40 = vpop.eup %1165 }
 0x49c   :  { %v890_v42 = vmul.f32 %v1166_v40, %v886_v39  ;;  %v895_v44 = vadd.f32 %v891_v43, %v883_v38 }
 0x49d   :  { %v1168_v45 = vpop.eup %1167 }
 0x49e   :  { %v893_v48 = vmul.f32 %v1168_v45, %v889_v41  ;;  %v894_v49 = vadd.f32 %v890_v42, %v882_v33  ;;  %899 = vst.msk [vmem:[#allocation2 + $0x8] sm:$0xff] %vm62_vm0, %v895_v44 }
 0x49f   :  { %v1170_v3 = vpop.eup %1169 }
 0x4a0   :  { %v892_v51 = vmul.f32 %v1170_v3, %v888_v47  ;;  %v897_v52 = vadd.f32 %v893_v48, %v885_v46  ;;  %898 = vst.msk [vmem:[#allocation2] sm:$0xff] %vm62_vm0, %v894_v49 }
 0x4a2   :  { %v896_v6 = vadd.f32 %v892_v51, %v884_v50  ;;  %901 = vst.msk [vmem:[#allocation2 + $0x18] sm:$0xff] %vm62_vm0, %v897_v52 }
 0x4a4   :  { %900 = vst.msk [vmem:[#allocation2 + $0x10] sm:$0xff] %vm62_vm0, %v896_v6 }
 0x4a5   :  { %1182 = shalt.err (!%p1179_p4)
}
 0x4a6   :  { %s1196_s18 = smov 128   ;;  %s1197_s19 = smov 8  }
 0x4a7   :  { %913 = dma.vmem_to_hbm [thread:$0]  %s908_s16, 512, %s1472_s6, [#allocation3], %s1196_s18, %s1196_s18, %s1197_s19  }
 0x4a8   :  { %1191 = dma.done.wait [#allocation3], 512  }
 0x4a9   :  { %1192 = vsyncadd [#allocation3], 4294966784 }
 0x4aa   :  { %917 = vsyncpa [#allocation3], 1 }

</bundles_post_ra>
